<compile_context>
chip_gen: v6e
topology: v6e:2x2x1
jax: 0.10.0
libtpu: 0.0.40
codegen_flags: <defaults>
</compile_context>

<pallas_src>
import jax
import jax.numpy as jnp
from jax import lax
from jax.experimental import pallas as pl
from jax.experimental.pallas import tpu as pltpu


def _round_up(x, m):
    return ((x + m - 1) // m) * m


# ----------------------------------------------------------------------------
# Kernel 1: fused embedding gather + input projection (both directions)
# ----------------------------------------------------------------------------
def embed_proj_kernel(src_ref, embed_ref, w_ref, b_ref, gi_ref):
    """src_ref: (rows_blk, 1) int32 token ids
       embed_ref: (VOCAB, E) resident
       w_ref: (E, 6*Hp) resident (fwd|bwd input weights concatenated on lanes)
       b_ref: (1, 6*Hp) resident
       gi_ref: (rows_blk, 6*Hp) output block.
    The gather is done as a one-hot matmul so the (T,B,E) activation never
    round-trips HBM, and both directions share one MXU weight push."""
    rows = src_ref.shape[0]
    vocab = embed_ref.shape[0]
    ids = src_ref[...]                                           # (rows, 1)
    cols = lax.broadcasted_iota(jnp.int32, (rows, vocab), 1)     # (rows, VOCAB)
    one_hot = jnp.where(ids == cols, 1.0, 0.0).astype(jnp.float32)
    emb = jnp.dot(one_hot, embed_ref[...],
                  preferred_element_type=jnp.float32)            # (rows, E)
    gi_ref[...] = (jnp.dot(emb, w_ref[...],
                           preferred_element_type=jnp.float32)
                   + b_ref[...])


# ----------------------------------------------------------------------------
# Kernel 2: fused bidirectional GRU recurrence (interleaved directions)
# ----------------------------------------------------------------------------
def bigru_recurrence_kernel(gi_ref, whhf_ref, whhb_ref, bhhf_ref, bhhb_ref,
                            out_ref, hn_ref, bwd_ref):
    """gi_ref : (T, Bp, 6*Hp)  precomputed input projections (fwd | bwd lanes)
       whh*   : (Hp, 3*Hp)     recurrent weights (lane-major)
       bhh*   : (1, 3*Hp)
       out_ref: (T, Bp, Hp)    fwd_half + bwd_half
       hn_ref : (2, Bp, Hp)    final hidden per direction (PyTorch layout)
       bwd_ref: VMEM scratch (T, Bp, Hp) — backward half, summed once at end
                (avoids per-step read-modify-write stores; v5e has 1 vst slot).
    """
    T, B, GH2 = gi_ref.shape
    GH = GH2 // 2                 # 3*Hp
    H = out_ref.shape[-1]         # Hp (128-aligned)

    # Hoist weight / bias loads out of the time loop.
    whh_f = whhf_ref[...]
    whh_b = whhb_ref[...]
    bhh_f = bhhf_ref[...]
    bhh_b = bhhb_ref[...]

    def gate_math(gi, gh, h_prev):
        # PyTorch nn.GRU gate order [r, z, n]; b_hn stays inside r * gh_n.
        r = jax.nn.sigmoid(gi[:, :H] + gh[:, :H])
        z = jax.nn.sigmoid(gi[:, H:2 * H] + gh[:, H:2 * H])
        n = jnp.tanh(gi[:, 2 * H:] + r * gh[:, 2 * H:])
        return (1.0 - z) * n + z * h_prev

    h0 = jnp.zeros((B, H), jnp.float32)

    # Interleave forward step t and backward step T-1-t: two independent
    # vmatmul -> EUP -> VPU chains per iteration hide each other's latency.
    def body(t, carry):
        h_f, h_b = carry
        tb = T - 1 - t
        # forward direction
        gh_f = jnp.dot(h_f, whh_f, preferred_element_type=jnp.float32) + bhh_f
        h_f = gate_math(gi_ref[t][:, :GH], gh_f, h_f)
        out_ref[t] = h_f.astype(out_ref.dtype)
        # backward direction (reverse time via index arithmetic, no HBM flips)
        gh_b = jnp.dot(h_b, whh_b, preferred_element_type=jnp.float32) + bhh_b
        h_b = gate_math(gi_ref[tb][:, GH:], gh_b, h_b)
        bwd_ref[tb] = h_b.astype(bwd_ref.dtype)
        return (h_f, h_b)

    # Bounded unroll: keeps LLO scheduling visibility without blowing vregs.
    h_f, h_b = lax.fori_loop(0, T, body, (h0, h0), unroll=min(T, 8))

    # Directional sum done once (single full-width pass), f32 accumulation.
    out_ref[...] = out_ref[...] + bwd_ref[...]

    # Final hiddens written exactly once.
    hn_ref[0] = h_f.astype(hn_ref.dtype)
    hn_ref[1] = h_b.astype(hn_ref.dtype)


# ----------------------------------------------------------------------------
# One-time parameter preparation (hoisted out of the per-call path)
# ----------------------------------------------------------------------------
def prepare_params(params, hidden_size):
    """Transpose to lane-major, zero-pad each gate's lanes H -> Hp (multiple of
    128), pad W_hh rows H -> Hp, and concatenate the two directions' input
    weights into one (E, 6*Hp) MXU RHS.  Padded lanes are exact zeros, so the
    unpadded lanes compute exactly the original GRU."""
    H = hidden_size
    Hp = _round_up(H, 128)

    def pad_gates(a):  # (..., 3H) -> (..., 3Hp), zero-pad each gate section
        lead = a.shape[:-1]
        a3 = a.reshape(lead + (3, H))
        a3 = jnp.pad(a3, [(0, 0)] * len(lead) + [(0, 0), (0, Hp - H)])
        return a3.reshape(lead + (3 * Hp,))

    w_ih_cat = jnp.concatenate(
        [pad_gates(params["w_ih_f"].T), pad_gates(params["w_ih_b"].T)], axis=1)
    b_ih_cat = jnp.concatenate(
        [pad_gates(params["b_ih_f"]), pad_gates(params["b_ih_b"])],
        axis=0).reshape(1, 6 * Hp)

    def prep_hh(w, b):
        wT = pad_gates(w.T)                          # (H, 3Hp)
        wT = jnp.pad(wT, ((0, Hp - H), (0, 0)))      # (Hp, 3Hp)
        return wT, pad_gates(b).reshape(1, 3 * Hp)

    w_hh_f, b_hh_f = prep_hh(params["w_hh_f"], params["b_hh_f"])
    w_hh_b, b_hh_b = prep_hh(params["w_hh_b"], params["b_hh_b"])

    return {
        "embed": params["embed"].astype(jnp.float32),
        "w_ih_cat": w_ih_cat, "b_ih_cat": b_ih_cat,
        "w_hh_f": w_hh_f, "b_hh_f": b_hh_f,
        "w_hh_b": w_hh_b, "b_hh_b": b_hh_b,
    }


# ----------------------------------------------------------------------------
# Wrapper: Encoder.forward(src, hidden=None)
# ----------------------------------------------------------------------------
_VMEM = pl.BlockSpec(memory_space=pltpu.MemorySpace.VMEM)
_VMEM_LIMIT = 32 * 1024 * 1024   # generous for these blocks; fits all chips


def encoder_forward(src, prep, hidden_size):
    """src: (T, B) int32 token ids. Returns (outputs (T,B,H), hidden (2,B,H))."""
    T, B = src.shape
    H = hidden_size
    Hp = prep["w_hh_f"].shape[0]
    VOCAB, E = prep["embed"].shape

    # Pad the batch (sublane) axis to a multiple of 8; pad tokens use id 0 and
    # the corresponding rows are sliced off at the end.
    Bp = _round_up(B, 8)
    src_p = jnp.pad(src, ((0, 0), (0, Bp - B))) if Bp != B else src
    src2d = src_p.reshape(T * Bp, 1).astype(jnp.int32)

    rows = T * Bp
    row_block = 512 if rows % 512 == 0 else rows   # production: 512-row tiles
    grid = (rows // row_block,)

    # 1) Fused gather + single (rows, E) @ (E, 6*Hp) input projection.
    gi2d = pl.pallas_call(
        embed_proj_kernel,
        out_shape=jax.ShapeDtypeStruct((rows, 6 * Hp), jnp.float32),
        grid_spec=pltpu.PrefetchScalarGridSpec(
            num_scalar_prefetch=0,
            grid=grid,
            in_specs=[
                pl.BlockSpec((row_block, 1), lambda i: (i, 0)),    # token ids
                pl.BlockSpec((VOCAB, E), lambda i: (0, 0)),        # embed (resident)
                pl.BlockSpec((E, 6 * Hp), lambda i: (0, 0)),       # W_ih cat (resident)
                pl.BlockSpec((1, 6 * Hp), lambda i: (0, 0)),       # b_ih cat (resident)
            ],
            out_specs=pl.BlockSpec((row_block, 6 * Hp), lambda i: (i, 0)),
        ),
        compiler_params=pltpu.CompilerParams(
            dimension_semantics=("parallel",),
            vmem_limit_bytes=_VMEM_LIMIT,
        ),
    )(src2d, prep["embed"], prep["w_ih_cat"], prep["b_ih_cat"])

    gi = gi2d.reshape(T, Bp, 6 * Hp)   # contiguous view, no data movement

    # 2) Fused bidirectional recurrence + directional sum + final hiddens.
    out_pad, hn_pad = pl.pallas_call(
        bigru_recurrence_kernel,
        out_shape=(jax.ShapeDtypeStruct((T, Bp, Hp), jnp.float32),
                   jax.ShapeDtypeStruct((2, Bp, Hp), jnp.float32)),
        in_specs=[_VMEM] * 5,
        out_specs=(_VMEM, _VMEM),
        scratch_shapes=[pltpu.VMEM((T, Bp, Hp), jnp.float32)],
        compiler_params=pltpu.CompilerParams(vmem_limit_bytes=_VMEM_LIMIT),
    )(gi, prep["w_hh_f"], prep["w_hh_b"], prep["b_hh_f"], prep["b_hh_b"])

    # Strip the batch/hidden padding.
    outputs = out_pad[:, :B, :H]
    hidden = hn_pad[:, :B, :H]
    return outputs, hidden


# ----------------------------------------------------------------------------
# Pure-JAX reference (for correctness check)
# ----------------------------------------------------------------------------
def ref_gru_dir(x, w_ih, w_hh, b_ih, b_hh, H):
    def step(h, x_t):
        gi = x_t @ w_ih.T + b_ih
        gh = h @ w_hh.T + b_hh
        r = jax.nn.sigmoid(gi[:, :H] + gh[:, :H])
        z = jax.nn.sigmoid(gi[:, H:2 * H] + gh[:, H:2 * H])
        n = jnp.tanh(gi[:, 2 * H:] + r * gh[:, 2 * H:])
        h_new = (1.0 - z) * n + z * h
        return h_new, h_new

    h0 = jnp.zeros((x.shape[1], H), jnp.float32)
    hT, outs = lax.scan(step, h0, x)
    return outs, hT


def ref_encoder(src, params, H):
    emb = jnp.take(params["embed"], src, axis=0)
    out_f, h_f = ref_gru_dir(emb, params["w_ih_f"], params["w_hh_f"],
                             params["b_ih_f"], params["b_hh_f"], H)
    out_b_rev, h_b = ref_gru_dir(emb[::-1], params["w_ih_b"], params["w_hh_b"],
                                 params["b_ih_b"], params["b_hh_b"], H)
    return out_f + out_b_rev[::-1], jnp.stack([h_f, h_b], axis=0)


# ----------------------------------------------------------------------------
# Main
# ----------------------------------------------------------------------------
if __name__ == "__main__":
    # Small shapes consistent with Encoder(input_size, embed_size, hidden_size)
    VOCAB, E, H = 20, 32, 32
    T, B = 8, 2

    key = jax.random.PRNGKey(0)
    ks = jax.random.split(key, 10)
    bound = 1.0 / (H ** 0.5)

    params = {
        "embed": jax.random.normal(ks[0], (VOCAB, E), jnp.float32),
        # forward direction (PyTorch layouts: (3H,E), (3H,H), (3H,), (3H,))
        "w_ih_f": jax.random.uniform(ks[1], (3 * H, E), jnp.float32, -bound, bound),
        "w_hh_f": jax.random.uniform(ks[2], (3 * H, H), jnp.float32, -bound, bound),
        "b_ih_f": jax.random.uniform(ks[3], (3 * H,), jnp.float32, -bound, bound),
        "b_hh_f": jax.random.uniform(ks[4], (3 * H,), jnp.float32, -bound, bound),
        # backward direction
        "w_ih_b": jax.random.uniform(ks[5], (3 * H, E), jnp.float32, -bound, bound),
        "w_hh_b": jax.random.uniform(ks[6], (3 * H, H), jnp.float32, -bound, bound),
        "b_ih_b": jax.random.uniform(ks[7], (3 * H,), jnp.float32, -bound, bound),
        "b_hh_b": jax.random.uniform(ks[8], (3 * H,), jnp.float32, -bound, bound),
    }

    src = jax.random.randint(ks[9], (T, B), 0, VOCAB, dtype=jnp.int32)

    prep = prepare_params(params, H)          # hoisted one-time weight prep
    outputs, hidden = encoder_forward(src, prep, H)
    outputs = jax.block_until_ready(outputs)
    hidden = jax.block_until_ready(hidden)

    ref_out, ref_hid = ref_encoder(src, params, H)
    assert outputs.shape == (T, B, H)
    assert hidden.shape == (2, B, H)
    assert jnp.allclose(outputs, ref_out, atol=1e-5, rtol=1e-5)
    assert jnp.allclose(hidden, ref_hid, atol=1e-5, rtol=1e-5)

    print("KERNEL_OK")
</pallas_src>

<mosaic_0001>
module attributes {stable_mosaic.version = 11 : i64} {
  func.func @embed_proj_kernel(%arg0: i32, %arg1: memref<64x1xi32, #tpu.memory_space<vmem>>, %arg2: memref<20x32xf32, #tpu.memory_space<vmem>>, %arg3: memref<32x768xf32, #tpu.memory_space<vmem>>, %arg4: memref<1x768xf32, #tpu.memory_space<vmem>>, %arg5: memref<64x768xf32, #tpu.memory_space<vmem>>) attributes {dimension_semantics = [#tpu.dimension_semantics<parallel>], iteration_bounds = array<i64: 1>, scalar_prefetch = 0 : i64, scratch_operands = 0 : i64, tpu.core_type = #tpu.core_type<tc>, window_params = [{transform_indices = @transform_0, window_bounds = array<i64: 64, 1>}, {pipeline_mode = #tpu.pipeline_mode<synchronous>, transform_indices = @transform_1, window_bounds = array<i64: 20, 32>}, {pipeline_mode = #tpu.pipeline_mode<synchronous>, transform_indices = @transform_2, window_bounds = array<i64: 32, 768>}, {pipeline_mode = #tpu.pipeline_mode<synchronous>, transform_indices = @transform_3, window_bounds = array<i64: 1, 768>}, {transform_indices = @transform_4, window_bounds = array<i64: 64, 768>}]} {
    %c0 = arith.constant 0 : index
    %c0_0 = arith.constant 0 : index
    %0 = vector.load %arg1[%c0, %c0_0] : memref<64x1xi32, #tpu.memory_space<vmem>>, vector<64x1xi32>
    %1 = tpu.iota {dimensions = array<i32: 1>} : vector<64x20xi32>
    %2 = vector.broadcast %0 : vector<64x1xi32> to vector<64x20xi32>
    %3 = arith.cmpi eq, %2, %1 : vector<64x20xi32>
    %cst = arith.constant 1.000000e+00 : f32
    %cst_1 = arith.constant 0.000000e+00 : f32
    %4 = vector.broadcast %cst : f32 to vector<64x20xf32>
    %5 = vector.broadcast %cst_1 : f32 to vector<64x20xf32>
    %6 = arith.select %3, %4, %5 : vector<64x20xi1>, vector<64x20xf32>
    %c0_2 = arith.constant 0 : index
    %c0_3 = arith.constant 0 : index
    %7 = vector.load %arg2[%c0_2, %c0_3] : memref<20x32xf32, #tpu.memory_space<vmem>>, vector<20x32xf32>
    %cst_4 = arith.constant dense<0.000000e+00> : vector<64x32xf32>
    %8 = tpu.matmul %6, %7, %cst_4 {dimension_numbers = #tpu.dot_dimension_numbers<[1], [0], [0], [1], [0, 0, 1, 1], [], []>} : vector<64x20xf32>, vector<20x32xf32>, vector<64x32xf32> -> vector<64x32xf32>
    %c0_5 = arith.constant 0 : index
    %c0_6 = arith.constant 0 : index
    %9 = vector.load %arg3[%c0_5, %c0_6] : memref<32x768xf32, #tpu.memory_space<vmem>>, vector<32x768xf32>
    %cst_7 = arith.constant dense<0.000000e+00> : vector<64x768xf32>
    %10 = tpu.matmul %8, %9, %cst_7 {dimension_numbers = #tpu.dot_dimension_numbers<[1], [0], [0], [1], [0, 0, 1, 1], [], []>} : vector<64x32xf32>, vector<32x768xf32>, vector<64x768xf32> -> vector<64x768xf32>
    %c0_8 = arith.constant 0 : index
    %c0_9 = arith.constant 0 : index
    %11 = vector.load %arg4[%c0_8, %c0_9] : memref<1x768xf32, #tpu.memory_space<vmem>>, vector<1x768xf32>
    %12 = vector.broadcast %11 : vector<1x768xf32> to vector<64x768xf32>
    %13 = arith.addf %10, %12 : vector<64x768xf32>
    %c0_10 = arith.constant 0 : index
    %c0_11 = arith.constant 0 : index
    %14 = vector.load %arg5[%c0_10, %c0_11] : memref<64x768xf32, #tpu.memory_space<vmem>>, vector<64x768xf32>
    tpu.vector_store %arg5[%c0_10, %c0_11], %13 {strides = array<i32>} : memref<64x768xf32, #tpu.memory_space<vmem>>, vector<64x768xf32>,
    return
  }
  func.func @transform_0(%arg0: i32) -> (i32, i32) {
    %c0_i32 = arith.constant 0 : i32
    %c0_i32_0 = arith.constant 0 : i32
    return %arg0, %c0_i32 : i32, i32
  }
  func.func @transform_1(%arg0: i32) -> (i32, i32) {
    %c0_i32 = arith.constant 0 : i32
    %c0_i32_0 = arith.constant 0 : i32
    %c0_i32_1 = arith.constant 0 : i32
    return %c0_i32, %c0_i32_0 : i32, i32
  }
  func.func @transform_2(%arg0: i32) -> (i32, i32) {
    %c0_i32 = arith.constant 0 : i32
    %c0_i32_0 = arith.constant 0 : i32
    %c0_i32_1 = arith.constant 0 : i32
    return %c0_i32, %c0_i32_0 : i32, i32
  }
  func.func @transform_3(%arg0: i32) -> (i32, i32) {
    %c0_i32 = arith.constant 0 : i32
    %c0_i32_0 = arith.constant 0 : i32
    %c0_i32_1 = arith.constant 0 : i32
    return %c0_i32, %c0_i32_0 : i32, i32
  }
  func.func @transform_4(%arg0: i32) -> (i32, i32) {
    %c0_i32 = arith.constant 0 : i32
    %c0_i32_0 = arith.constant 0 : i32
    return %arg0, %c0_i32 : i32, i32
  }
}

</mosaic_0001>

<bundles_post_ra>
// kernel: tpu_custom_call.1
= control target key start
LH: loop header
LB: loop body
LE: loop exit
PB: predicated region body
PF: predicated region fallthrough
CT: control target
= control target key end

     0   :  { %9 = vsyncpa [#allocation3], 0  ;;  %s1057_s0 = inlined_call_operand.vmem [shape: s32[64,1], index: 0, kind: input, shape index: {}]   ;;  %s1058_s1 = inlined_call_operand.vmem [shape: f32[20,32], index: 1, kind: input, shape index: {}]   ;;  %s1059_s2 = inlined_call_operand.hbm [shape: f32[32,768], index: 2, kind: input, shape index: {}]   ;;  %s1060_s3 = inlined_call_operand.vmem [shape: f32[1,768], index: 3, kind: input, shape index: {}]   ;;  %s1061_s4 = inlined_call_operand.hbm [shape: f32[64,768], index: 4, kind: output, shape index: {}]  }
   0x1   :  { %10 = vsyncpa [#allocation4], 0  ;;  %s826_s15 = smov [#allocation2]  }
   0x2   :  { %s20_s16 = sshll.u32 %s826_s15, 4  ;;  %s21_s16 = int_to_ptr.vmem [resolvable:$true] %s20_s16 }
   0x3   :  { %s790_s17 = scalar_lea.vmem %s21_s16, 3072  ;;  %p795_p1 = scmp.lt.s32.totalorder %s21_s16, %s21_s16 }
   0x4   :  { %p791_p0 = scmp.ne.s32.totalorder %s21_s16, %s790_s17  ;;  %p796_p2 = scmp.lt.s32.totalorder %s790_s17, %s790_s17 }
   0x6   :  { %p797_p3 = por %p796_p2, %p795_p1 }
   0x8   :  { %p798_p4 = pnand %p797_p3, %p791_p0 }
   0xa   :  { %801 = shalt.err (!%p798_p4)
}
   0xb   :  { %s827_s18 = smov 768   ;;  %s828_s19 = smov 48  }
   0xc   :  { %26 = dma.hbm_to_vmem [thread:$0]  %s1059_s2, 3072, %s21_s16, [#allocation3], %s827_s18, %s827_s18, %s828_s19  }
   0xd   :  { %822 = dma.done.wait [#allocation3], 3072  }
   0xe   :  { %823 = vsyncadd [#allocation3], 4294964224  ;;  %v829_v0 = vmov 0   ;;  %v830_v1 = vmov 0.0   ;;  %v34_v2 = vld [vmem:[%s1057_s0 + $0x10] sm:$0xff]  ;;  %v32_v3 = vld [vmem:[%s1057_s0] sm:$0xff]  ;;  %v40_v18 = vlaneseq }
   0xf   :  { %781 = vset.pattern.permute.xlu1 %v829_v0  ;;  %780 = vset.pattern.permute.xlu0 %v829_v0  ;;  %vm110_vm0 = vcmask 1043456   ;;  %v35_v4 = vld [vmem:[%s1057_s0 + $0x18] sm:$0xff]  ;;  %v33_v5 = vld [vmem:[%s1057_s0 + $0x8] sm:$0xff]  ;;  %v84_v6 = vld [vmem:[%s1058_s1 + $0x10] sm:$0xf]  ;;  %vm85_vm1 = vcmask 162816  }
  0x10   :  { %376 = vmatprep.mubr.f32.mxu1 %v830_v1  ;;  %49 = vperm.xlu1 %781, %v34_v2   ;;  %v83_v7 = vld [vmem:[%s1058_s1 + $0x8] sm:$0xff]  ;;  %v82_v8 = vld [vmem:[%s1058_s1] sm:$0xff]  ;;  %v39_v11 = vld [vmem:[%s1057_s0 + $0x38] sm:$0xff]  ;;  %v41_v19 = vand.u32 127, %v40_v18  ;;  %vm275_vm10 = vcmask 261120   ;;  %v972_v63 = vshrl.u32 %v40_v18, 7 }
  0x11   :  { %43 = vperm.xlu0 %780, %v32_v3   ;;  %748 = vmatprep.subr.msk.mxu0 %vm110_vm0, %v84_v6  ;;  %v37_v9 = vld [vmem:[%s1057_s0 + $0x28] sm:$0xff]  ;;  %v36_v10 = vld [vmem:[%s1057_s0 + $0x20] sm:$0xff]  ;;  %v38_v12 = vld [vmem:[%s1057_s0 + $0x30] sm:$0xff] }
  0x12   :  { %749 = vmatpush3.msk.msra.mxu0 %vm110_vm0, %v84_v6  ;;  %v238_v13 = vld [vmem:[#allocation2 + $0x98] sm:$0xff]  ;;  %v237_v14 = vld [vmem:[#allocation2 + $0x90] sm:$0xff]  ;;  %v232_v15 = vld [vmem:[#allocation2 + $0x68] sm:$0xff]  ;;  %v247_v0 = vsub.s32 0, %v972_v63  ;;  %v251_v3 = vsub.s32 1, %v972_v63 }
  0x13   :  { %750 = vmatprep.subr.mxu0 %v83_v7  ;;  %766 = vmatprep.subr.mxu1 %v238_v13  ;;  %v231_v16 = vld [vmem:[#allocation2 + $0x60] sm:$0xff]  ;;  %v226_v17 = vld [vmem:[#allocation2 + $0x38] sm:$0xff]  ;;  %v225_v36 = vld [vmem:[#allocation2 + $0x30] sm:$0xff] }
  0x14   :  { %52 = vperm.xlu1 %781, %v35_v4   ;;  %751 = vmatpush3.msra.mxu0 %v83_v7  ;;  %v220_v37 = vld [vmem:[#allocation2 + $0x8] sm:$0xff]  ;;  %v219_v38 = vld [vmem:[#allocation2] sm:$0xff]  ;;  %v242_v40 = vld [vmem:[#allocation2 + $0xb8] sm:$0xff] }
  0x15   :  { %46 = vperm.xlu0 %780, %v33_v5   ;;  %752 = vmatprep.subr.mxu0 %v82_v8  ;;  %v240_v39 = vld [vmem:[#allocation2 + $0xa8] sm:$0xff]  ;;  %v239_v42 = vld [vmem:[#allocation2 + $0xa0] sm:$0xff]  ;;  %v234_v44 = vld [vmem:[#allocation2 + $0x78] sm:$0xff] }
  0x16   :  { %753 = vmatpush3.msra.mxu0 %v82_v8  ;;  %770 = vmatpush1.msra.mxu1 %v237_v14  ;;  %v233_v45 = vld [vmem:[#allocation2 + $0x70] sm:$0xff]  ;;  %v228_v47 = vld [vmem:[#allocation2 + $0x48] sm:$0xff]  ;;  %v227_v50 = vld [vmem:[#allocation2 + $0x40] sm:$0xff]  ;;  %v255_v8 = vsub.s32 2, %v972_v63 }
  0x17   :  { %324 = vmatprep.subr.mxu0 %v238_v13  ;;  %767 = vmatprep.subr.mxu1 %v232_v15  ;;  %v241_v48 = vld [vmem:[#allocation2 + $0xb0] sm:$0xff]  ;;  %v222_v51 = vld [vmem:[#allocation2 + $0x18] sm:$0xff]  ;;  %v236_v53 = vld [vmem:[#allocation2 + $0x88] sm:$0xff] }
  0x18   :  { %58 = vperm.xlu1 %781, %v37_v9   ;;  %771 = vmatpush1.msra.mxu1 %v231_v16  ;;  %v221_v52 = vld [vmem:[#allocation2 + $0x10] sm:$0xff]  ;;  %v235_v55 = vld [vmem:[#allocation2 + $0x80] sm:$0xff]  ;;  %v230_v56 = vld [vmem:[#allocation2 + $0x58] sm:$0xff] }
  0x19   :  { %55 = vperm.xlu0 %780, %v36_v10   ;;  %768 = vmatprep.subr.mxu1 %v226_v17  ;;  %v229_v58 = vld [vmem:[#allocation2 + $0x50] sm:$0xff]  ;;  %v224_v59 = vld [vmem:[#allocation2 + $0x28] sm:$0xff]  ;;  %v223_v61 = vld [vmem:[#allocation2 + $0x20] sm:$0xff] }
  0x1a   :  { %772 = vmatpush1.msra.mxu1 %v225_v36  ;;  %v978_v2 = vld [vmem:[%s1060_s3] sm:$0x3f]  ;;  %s831_s3 = smov [#allocation5]  }
  0x1b   :  { %769 = vmatprep.subr.mxu1 %v220_v37  ;;  %v982_v4 = vrot.slane %v978_v2, %v247_v0  ;;  %v985_v5 = vrot.slane %v978_v2, %v251_v3  ;;  %s692_s17 = sshll.u32 %s831_s3, 4  ;;  %s693_s17 = int_to_ptr.vmem [resolvable:$true] %s692_s17 }
  0x1c   :  { %64 = vperm.xlu1 %781, %v39_v11   ;;  %773 = vmatpush1.msra.mxu1 %v219_v38  ;;  %s802_s20 = scalar_lea.vmem %s693_s17, 6144  ;;  %p807_p6 = scmp.lt.s32.totalorder %s693_s17, %s693_s17 }
  0x1d   :  { %61 = vperm.xlu0 %780, %v38_v12   ;;  %550 = vmatprep.subr.mxu1 %v242_v40  ;;  %v259_v12 = vsub.s32 3, %v972_v63  ;;  %p803_p5 = scmp.ne.s32.totalorder %s693_s17, %s802_s20  ;;  %p808_p7 = scmp.lt.s32.totalorder %s802_s20, %s802_s20 }
  0x1f   :  { %p809_p8 = por %p808_p7, %p807_p6 }
  0x21   :  { %p810_p9 = pnand %p809_p8, %p803_p5 }
  0x8b   :  { %v50_v20 = vpop.permute.xlu1 %49 }
  0x8c   :  { %v44_v21 = vpop.permute.xlu0 %43  ;;  %vm68_vm3 = vcmp.eq.s32.totalorder %v50_v20, %v41_v19 }
  0x8d   :  { %vm66_vm2 = vcmp.eq.s32.totalorder %v44_v21, %v41_v19  ;;  %v76_v25 = vsel %vm68_vm3, 1.0, %v830_v1  ;;  %v999_v21 = vrot.slane %v978_v2, %v259_v12 }
  0x8e   :  { %v74_v22 = vsel %vm66_vm2, 1.0, %v830_v1 }
  0x8f   :  { %754 = vmatprep.mubr.msk.f32.mxu0 %vm85_vm1, %v74_v22  ;;  %v53_v23 = vpop.permute.xlu1 %52 }
  0x90   :  { %v47_v24 = vpop.permute.xlu0 %46  ;;  %vm69_vm5 = vcmp.eq.s32.totalorder %v53_v23, %v41_v19 }
  0x91   :  { %vm67_vm4 = vcmp.eq.s32.totalorder %v47_v24, %v41_v19  ;;  %v77_v29 = vsel %vm69_vm5, 1.0, %v830_v1 }
  0x92   :  { %v75_v26 = vsel %vm67_vm4, 1.0, %v830_v1 }
  0x93   :  { %755 = vmatmul.mubr.msk.f32.vlgmr.msra.gmra.mxu0 %vm85_vm1, %v75_v26  ;;  %v59_v27 = vpop.permute.xlu1 %58 }
  0x94   :  { %757 = vmatprep.mubr.msk.f32.mxu0 %vm85_vm1, %v76_v25  ;;  %v56_v28 = vpop.permute.xlu0 %55  ;;  %325 = vmatpush1.msra.mxu0 %v237_v14  ;;  %vm71_vm7 = vcmp.eq.s32.totalorder %v59_v27, %v41_v19 }
  0x95   :  { %vm70_vm6 = vcmp.eq.s32.totalorder %v56_v28, %v41_v19  ;;  %326 = vmatprep.subr.mxu0 %v232_v15  ;;  %v79_v33 = vsel %vm71_vm7, 1.0, %v830_v1 }
  0x96   :  { %v78_v30 = vsel %vm70_vm6, 1.0, %v830_v1  ;;  %327 = vmatpush1.msra.mxu0 %v231_v16 }
  0x97   :  { %758 = vmatmul.mubr.msk.f32.gmra.mxu0 %vm85_vm1, %v77_v29  ;;  %328 = vmatprep.subr.mxu0 %v226_v17  ;;  %v65_v31 = vpop.permute.xlu1 %64  ;;  %v994_v17 = vrot.slane %v978_v2, %v255_v8 }
  0x98   :  { %760 = vmatprep.mubr.msk.f32.mxu0 %vm85_vm1, %v78_v30  ;;  %v62_v32 = vpop.permute.xlu0 %61  ;;  %vm73_vm9 = vcmp.eq.s32.totalorder %v65_v31, %v41_v19  ;;  %329 = vmatpush1.msra.mxu0 %v225_v36 }
  0x99   :  { %vm72_vm8 = vcmp.eq.s32.totalorder %v62_v32, %v41_v19  ;;  %v81_v35 = vsel %vm73_vm9, 1.0, %v830_v1  ;;  %330 = vmatprep.subr.mxu0 %v220_v37 }
  0x9a   :  { %v80_v34 = vsel %vm72_vm8, 1.0, %v830_v1  ;;  %331 = vmatpush1.msra.mxu0 %v219_v38 }
  0x9b   :  { %761 = vmatmul.mubr.msk.f32.gmra.mxu0 %vm85_vm1, %v79_v33  ;;  %437 = vmatprep.subr.mxu0 %v240_v39 }
  0x9c   :  { %763 = vmatprep.mubr.msk.f32.mxu0 %vm85_vm1, %v80_v34 }
  0x9f   :  { %764 = vmatmul.mubr.msk.f32.gmra.mxu0 %vm85_vm1, %v81_v35 }
  0xa0   :  { %364 = vmatprep.mubr.f32.mxu0 %v830_v1 }
 0x153   :  { %v915_v41 = vpop.f32.mrf.mxu0 }
 0x155   :  { %v180_v43 = vpop.f32.mrf.mxu0 }
 0x156   :  { %713 = vmatmul.mubr.msk.f32.vlgmr.msra.gmra.mxu0 %vm275_vm10, %v180_v43 }
 0x157   :  { %v918_v46 = vpop.f32.mrf.mxu0  ;;  %438 = vmatpush1.msra.mxu0 %v239_v42  ;;  %370 = vmatprep.mubr.f32.mxu0 %v830_v1 }
 0x158   :  { %439 = vmatprep.subr.mxu0 %v234_v44 }
 0x159   :  { %v190_v49 = vpop.f32.mrf.mxu0  ;;  %440 = vmatpush1.msra.mxu0 %v233_v45 }
 0x15a   :  { %714 = vmatmul.mubr.msk.f32.gmra.mxu0 %vm275_vm10, %v915_v41  ;;  %715 = vmatmul.mubr.msk.f32.vlgmr.msra.gmra.mxu1 %vm275_vm10, %v190_v49 }
 0x15b   :  { %441 = vmatprep.subr.mxu0 %v228_v47  ;;  %551 = vmatpush1.msra.mxu1 %v241_v48  ;;  %v762_v54 = vpop.f32.mrf.mxu0  ;;  %v263_v48 = vsub.s32 4, %v972_v63 }
 0x15c   :  { %442 = vmatpush1.msra.mxu0 %v227_v50  ;;  %382 = vmatprep.mubr.f32.mxu1 %v830_v1 }
 0x15d   :  { %443 = vmatprep.subr.mxu0 %v222_v51  ;;  %477 = vmatprep.mubr.f32.mxu0 %v830_v1  ;;  %v200_v57 = vpop.f32.mrf.mxu0 }
 0x15e   :  { %444 = vmatpush1.msra.mxu0 %v221_v52  ;;  %716 = vmatmul.mubr.msk.f32.gmra.mxu1 %vm275_vm10, %v918_v46 }
 0x15f   :  { %721 = vmatmul.mubr.msk.f32.vlgmr.msra.gmra.mxu0 %vm275_vm10, %v180_v43  ;;  %552 = vmatprep.subr.mxu1 %v236_v53  ;;  %v765_v60 = vpop.f32.mrf.mxu0  ;;  %v267_v53 = vsub.s32 5, %v972_v63 }
 0x160   :  { %553 = vmatpush1.msra.mxu1 %v235_v55  ;;  %388 = vmatprep.mubr.f32.mxu1 %v830_v1 }
 0x161   :  { %483 = vmatprep.mubr.f32.mxu0 %v830_v1  ;;  %554 = vmatprep.subr.mxu1 %v230_v56  ;;  %v210_v62 = vpop.f32.mrf.mxu0  ;;  %v1026_v63 = vrot.slane %v978_v2, %v267_v53 }
 0x162   :  { %717 = vmatmul.mubr.msk.f32.gmra.mxu1 %vm275_vm10, %v200_v57 }
 0x163   :  { %722 = vmatmul.mubr.msk.f32.gmra.mxu0 %vm275_vm10, %v915_v41  ;;  %394 = vmatprep.mubr.f32.mxu1 %v830_v1 }
 0x164   :  { %489 = vmatprep.mubr.f32.mxu0 %v830_v1  ;;  %555 = vmatpush1.msra.mxu1 %v229_v58  ;;  %v1021_v58 = vrot.slane %v978_v2, %v263_v48 }
 0x165   :  { %556 = vmatprep.subr.mxu1 %v224_v59 }
 0x166   :  { %718 = vmatmul.mubr.msk.f32.gmra.mxu1 %vm275_vm10, %v762_v54 }
 0x167   :  { %723 = vmatmul.mubr.msk.f32.gmra.mxu0 %vm275_vm10, %v190_v49  ;;  %400 = vmatprep.mubr.f32.mxu1 %v830_v1 }
 0x168   :  { %495 = vmatprep.mubr.f32.mxu0 %v830_v1  ;;  %557 = vmatpush1.msra.mxu1 %v223_v61 }
 0x16a   :  { %719 = vmatmul.mubr.msk.f32.gmra.mxu1 %vm275_vm10, %v210_v62 }
 0x16b   :  { %724 = vmatmul.mubr.msk.f32.gmra.mxu0 %vm275_vm10, %v918_v46  ;;  %406 = vmatprep.mubr.f32.mxu1 %v830_v1 }
 0x16c   :  { %501 = vmatprep.mubr.f32.mxu0 %v830_v1 }
 0x16e   :  { %720 = vmatmul.mubr.msk.f32.gmra.mxu1 %vm275_vm10, %v765_v60 }
 0x16f   :  { %725 = vmatmul.mubr.msk.f32.gmra.mxu0 %vm275_vm10, %v200_v57  ;;  %590 = vmatprep.mubr.f32.mxu1 %v830_v1 }
 0x170   :  { %507 = vmatprep.mubr.f32.mxu0 %v830_v1 }
 0x172   :  { %729 = vmatmul.mubr.msk.f32.vlgmr.msra.gmra.mxu1 %vm275_vm10, %v180_v43 }
 0x173   :  { %726 = vmatmul.mubr.msk.f32.gmra.mxu0 %vm275_vm10, %v762_v54  ;;  %596 = vmatprep.mubr.f32.mxu1 %v830_v1 }
 0x174   :  { %513 = vmatprep.mubr.f32.mxu0 %v830_v1 }
 0x176   :  { %730 = vmatmul.mubr.msk.f32.gmra.mxu1 %vm275_vm10, %v915_v41 }
 0x177   :  { %727 = vmatmul.mubr.msk.f32.gmra.mxu0 %vm275_vm10, %v210_v62  ;;  %602 = vmatprep.mubr.f32.mxu1 %v830_v1 }
 0x178   :  { %519 = vmatprep.mubr.f32.mxu0 %v830_v1 }
 0x17a   :  { %731 = vmatmul.mubr.msk.f32.gmra.mxu1 %vm275_vm10, %v190_v49 }
 0x17b   :  { %728 = vmatmul.mubr.msk.f32.gmra.mxu0 %vm275_vm10, %v765_v60  ;;  %608 = vmatprep.mubr.f32.mxu1 %v830_v1 }
 0x17e   :  { %732 = vmatmul.mubr.msk.f32.gmra.mxu1 %vm275_vm10, %v918_v46 }
 0x17f   :  { %614 = vmatprep.mubr.f32.mxu1 %v830_v1 }
 0x182   :  { %733 = vmatmul.mubr.msk.f32.gmra.mxu1 %vm275_vm10, %v200_v57 }
 0x183   :  { %620 = vmatprep.mubr.f32.mxu1 %v830_v1 }
 0x186   :  { %734 = vmatmul.mubr.msk.f32.gmra.mxu1 %vm275_vm10, %v762_v54 }
 0x187   :  { %626 = vmatprep.mubr.f32.mxu1 %v830_v1 }
 0x18a   :  { %735 = vmatmul.mubr.msk.f32.gmra.mxu1 %vm275_vm10, %v210_v62 }
 0x18b   :  { %632 = vmatprep.mubr.f32.mxu1 %v830_v1 }
 0x18e   :  { %736 = vmatmul.mubr.msk.f32.gmra.mxu1 %vm275_vm10, %v765_v60 }
 0x216   :  { %v366_v1 = vpop.f32.mrf.mxu0 }
 0x217   :  { %v367_v6 = vadd.f32 %v366_v1, %v982_v4 }
 0x218   :  { %v368_v7 = vpop.f32.mrf.mxu0 }
 0x219   :  { %639 = vst [vmem:[#allocation5] sm:$0xff] %v367_v6  ;;  %v369_v9 = vadd.f32 %v368_v7, %v985_v5 }
 0x21a   :  { %v372_v10 = vpop.f32.mrf.mxu0  ;;  %v378_v11 = vpop.f32.mrf.mxu1 }
 0x21b   :  { %640 = vst [vmem:[#allocation5 + $0x8] sm:$0xff] %v369_v9  ;;  %v373_v13 = vadd.f32 %v372_v10, %v982_v4  ;;  %v379_v14 = vadd.f32 %v378_v11, %v982_v4 }
 0x21c   :  { %v374_v15 = vpop.f32.mrf.mxu0  ;;  %v380_v16 = vpop.f32.mrf.mxu1 }
 0x21d   :  { %645 = vst [vmem:[#allocation5 + $0x30] sm:$0xff] %v373_v13  ;;  %651 = vst [vmem:[#allocation5 + $0x60] sm:$0xff] %v379_v14  ;;  %v375_v18 = vadd.f32 %v374_v15, %v985_v5  ;;  %v381_v19 = vadd.f32 %v380_v16, %v985_v5 }
 0x21e   :  { %v384_v20 = vpop.f32.mrf.mxu1 }
 0x21f   :  { %646 = vst [vmem:[#allocation5 + $0x38] sm:$0xff] %v375_v18  ;;  %652 = vst [vmem:[#allocation5 + $0x68] sm:$0xff] %v381_v19  ;;  %v385_v22 = vadd.f32 %v384_v20, %v982_v4  ;;  %v479_v23 = vpop.f32.mrf.mxu0 }
 0x220   :  { %v480_v24 = vadd.f32 %v479_v23, %v994_v17  ;;  %v386_v25 = vpop.f32.mrf.mxu1 }
 0x221   :  { %657 = vst [vmem:[#allocation5 + $0x90] sm:$0xff] %v385_v22  ;;  %v387_v26 = vadd.f32 %v386_v25, %v985_v5  ;;  %v481_v27 = vpop.f32.mrf.mxu0 }
 0x222   :  { %641 = vst [vmem:[#allocation5 + $0x10] sm:$0xff] %v480_v24  ;;  %v482_v28 = vadd.f32 %v481_v27, %v999_v21  ;;  %v390_v29 = vpop.f32.mrf.mxu1 }
 0x223   :  { %658 = vst [vmem:[#allocation5 + $0x98] sm:$0xff] %v387_v26  ;;  %v391_v30 = vadd.f32 %v390_v29, %v982_v4  ;;  %v485_v31 = vpop.f32.mrf.mxu0 }
 0x224   :  { %642 = vst [vmem:[#allocation5 + $0x18] sm:$0xff] %v482_v28  ;;  %v486_v32 = vadd.f32 %v485_v31, %v994_v17  ;;  %v392_v33 = vpop.f32.mrf.mxu1 }
 0x225   :  { %663 = vst [vmem:[#allocation5 + $0xc0] sm:$0xff] %v391_v30  ;;  %v393_v34 = vadd.f32 %v392_v33, %v985_v5  ;;  %v487_v35 = vpop.f32.mrf.mxu0 }
 0x226   :  { %647 = vst [vmem:[#allocation5 + $0x40] sm:$0xff] %v486_v32  ;;  %v488_v36 = vadd.f32 %v487_v35, %v999_v21  ;;  %v396_v37 = vpop.f32.mrf.mxu1 }
 0x227   :  { %664 = vst [vmem:[#allocation5 + $0xc8] sm:$0xff] %v393_v34  ;;  %v397_v38 = vadd.f32 %v396_v37, %v982_v4  ;;  %v491_v39 = vpop.f32.mrf.mxu0 }
 0x228   :  { %648 = vst [vmem:[#allocation5 + $0x48] sm:$0xff] %v488_v36  ;;  %v492_v40 = vadd.f32 %v491_v39, %v994_v17  ;;  %v398_v41 = vpop.f32.mrf.mxu1 }
 0x229   :  { %669 = vst [vmem:[#allocation5 + $0xf0] sm:$0xff] %v397_v38  ;;  %v399_v42 = vadd.f32 %v398_v41, %v985_v5  ;;  %v493_v43 = vpop.f32.mrf.mxu0 }
 0x22a   :  { %653 = vst [vmem:[#allocation5 + $0x70] sm:$0xff] %v492_v40  ;;  %v494_v44 = vadd.f32 %v493_v43, %v999_v21  ;;  %v402_v45 = vpop.f32.mrf.mxu1 }
 0x22b   :  { %670 = vst [vmem:[#allocation5 + $0xf8] sm:$0xff] %v399_v42  ;;  %v403_v46 = vadd.f32 %v402_v45, %v982_v4  ;;  %v497_v47 = vpop.f32.mrf.mxu0 }
 0x22c   :  { %654 = vst [vmem:[#allocation5 + $0x78] sm:$0xff] %v494_v44  ;;  %v498_v49 = vadd.f32 %v497_v47, %v994_v17  ;;  %v404_v50 = vpop.f32.mrf.mxu1 }
 0x22d   :  { %675 = vst [vmem:[#allocation5 + $0x120] sm:$0xff] %v403_v46  ;;  %v405_v51 = vadd.f32 %v404_v50, %v985_v5  ;;  %v499_v52 = vpop.f32.mrf.mxu0 }
 0x22e   :  { %659 = vst [vmem:[#allocation5 + $0xa0] sm:$0xff] %v498_v49  ;;  %v500_v54 = vadd.f32 %v499_v52, %v999_v21  ;;  %v408_v55 = vpop.f32.mrf.mxu1 }
 0x22f   :  { %676 = vst [vmem:[#allocation5 + $0x128] sm:$0xff] %v405_v51  ;;  %v409_v56 = vadd.f32 %v408_v55, %v982_v4  ;;  %v503_v57 = vpop.f32.mrf.mxu0 }
 0x230   :  { %660 = vst [vmem:[#allocation5 + $0xa8] sm:$0xff] %v500_v54  ;;  %v504_v59 = vadd.f32 %v503_v57, %v994_v17  ;;  %v410_v60 = vpop.f32.mrf.mxu1 }
 0x231   :  { %681 = vst [vmem:[#allocation5 + $0x150] sm:$0xff] %v409_v56  ;;  %v411_v61 = vadd.f32 %v410_v60, %v985_v5  ;;  %v505_v62 = vpop.f32.mrf.mxu0 }
 0x232   :  { %665 = vst [vmem:[#allocation5 + $0xd0] sm:$0xff] %v504_v59  ;;  %v506_v0 = vadd.f32 %v505_v62, %v999_v21  ;;  %v592_v3 = vpop.f32.mrf.mxu1 }
 0x233   :  { %682 = vst [vmem:[#allocation5 + $0x158] sm:$0xff] %v411_v61  ;;  %v509_v4 = vpop.f32.mrf.mxu0  ;;  %v593_v1 = vadd.f32 %v592_v3, %v1021_v58 }
 0x234   :  { %666 = vst [vmem:[#allocation5 + $0xd8] sm:$0xff] %v506_v0  ;;  %v510_v6 = vadd.f32 %v509_v4, %v994_v17  ;;  %v594_v7 = vpop.f32.mrf.mxu1 }
 0x235   :  { %643 = vst [vmem:[#allocation5 + $0x20] sm:$0xff] %v593_v1  ;;  %v511_v8 = vpop.f32.mrf.mxu0  ;;  %v595_v5 = vadd.f32 %v594_v7, %v1026_v63 }
 0x236   :  { %671 = vst [vmem:[#allocation5 + $0x100] sm:$0xff] %v510_v6  ;;  %v512_v2 = vadd.f32 %v511_v8, %v999_v21  ;;  %v598_v9 = vpop.f32.mrf.mxu1 }
 0x237   :  { %644 = vst [vmem:[#allocation5 + $0x28] sm:$0xff] %v595_v5  ;;  %v515_v10 = vpop.f32.mrf.mxu0  ;;  %v599_v11 = vadd.f32 %v598_v9, %v1021_v58 }
 0x238   :  { %672 = vst [vmem:[#allocation5 + $0x108] sm:$0xff] %v512_v2  ;;  %v516_v12 = vadd.f32 %v515_v10, %v994_v17  ;;  %v600_v13 = vpop.f32.mrf.mxu1 }
 0x239   :  { %649 = vst [vmem:[#allocation5 + $0x50] sm:$0xff] %v599_v11  ;;  %v517_v14 = vpop.f32.mrf.mxu0  ;;  %v601_v15 = vadd.f32 %v600_v13, %v1026_v63 }
 0x23a   :  { %677 = vst [vmem:[#allocation5 + $0x130] sm:$0xff] %v516_v12  ;;  %v518_v16 = vadd.f32 %v517_v14, %v999_v21  ;;  %v604_v18 = vpop.f32.mrf.mxu1 }
 0x23b   :  { %650 = vst [vmem:[#allocation5 + $0x58] sm:$0xff] %v601_v15  ;;  %v521_v19 = vpop.f32.mrf.mxu0  ;;  %v605_v20 = vadd.f32 %v604_v18, %v1021_v58 }
 0x23c   :  { %678 = vst [vmem:[#allocation5 + $0x138] sm:$0xff] %v518_v16  ;;  %v522_v22 = vadd.f32 %v521_v19, %v994_v17  ;;  %v606_v23 = vpop.f32.mrf.mxu1 }
 0x23d   :  { %655 = vst [vmem:[#allocation5 + $0x80] sm:$0xff] %v605_v20  ;;  %v523_v24 = vpop.f32.mrf.mxu0  ;;  %v607_v25 = vadd.f32 %v606_v23, %v1026_v63 }
 0x23e   :  { %683 = vst [vmem:[#allocation5 + $0x160] sm:$0xff] %v522_v22  ;;  %v524_v26 = vadd.f32 %v523_v24, %v999_v21  ;;  %v610_v27 = vpop.f32.mrf.mxu1 }
 0x23f   :  { %656 = vst [vmem:[#allocation5 + $0x88] sm:$0xff] %v607_v25  ;;  %v611_v28 = vadd.f32 %v610_v27, %v1021_v58 }
 0x240   :  { %684 = vst [vmem:[#allocation5 + $0x168] sm:$0xff] %v524_v26  ;;  %v612_v29 = vpop.f32.mrf.mxu1 }
 0x241   :  { %661 = vst [vmem:[#allocation5 + $0xb0] sm:$0xff] %v611_v28  ;;  %v613_v30 = vadd.f32 %v612_v29, %v1026_v63 }
 0x242   :  { %v616_v31 = vpop.f32.mrf.mxu1 }
 0x243   :  { %662 = vst [vmem:[#allocation5 + $0xb8] sm:$0xff] %v613_v30  ;;  %v617_v17 = vadd.f32 %v616_v31, %v1021_v58 }
 0x244   :  { %v618_v32 = vpop.f32.mrf.mxu1 }
 0x245   :  { %667 = vst [vmem:[#allocation5 + $0xe0] sm:$0xff] %v617_v17  ;;  %v619_v33 = vadd.f32 %v618_v32, %v1026_v63 }
 0x246   :  { %v622_v34 = vpop.f32.mrf.mxu1 }
 0x247   :  { %668 = vst [vmem:[#allocation5 + $0xe8] sm:$0xff] %v619_v33  ;;  %v623_v21 = vadd.f32 %v622_v34, %v1021_v58 }
 0x248   :  { %v624_v35 = vpop.f32.mrf.mxu1 }
 0x249   :  { %673 = vst [vmem:[#allocation5 + $0x110] sm:$0xff] %v623_v21  ;;  %v625_v36 = vadd.f32 %v624_v35, %v1026_v63 }
 0x24a   :  { %v628_v37 = vpop.f32.mrf.mxu1 }
 0x24b   :  { %674 = vst [vmem:[#allocation5 + $0x118] sm:$0xff] %v625_v36  ;;  %v629_v38 = vadd.f32 %v628_v37, %v1021_v58 }
 0x24c   :  { %v630_v39 = vpop.f32.mrf.mxu1 }
 0x24d   :  { %679 = vst [vmem:[#allocation5 + $0x140] sm:$0xff] %v629_v38  ;;  %v631_v40 = vadd.f32 %v630_v39, %v1026_v63 }
 0x24e   :  { %v634_v41 = vpop.f32.mrf.mxu1 }
 0x24f   :  { %680 = vst [vmem:[#allocation5 + $0x148] sm:$0xff] %v631_v40  ;;  %v635_v42 = vadd.f32 %v634_v41, %v1021_v58 }
 0x250   :  { %v636_v43 = vpop.f32.mrf.mxu1 }
 0x251   :  { %685 = vst [vmem:[#allocation5 + $0x170] sm:$0xff] %v635_v42  ;;  %v637_v44 = vadd.f32 %v636_v43, %v1026_v63 }
 0x253   :  { %686 = vst [vmem:[#allocation5 + $0x178] sm:$0xff] %v637_v44 }
 0x254   :  { %813 = shalt.err (!%p810_p9)
}
 0x255   :  { %698 = dma.vmem_to_hbm [thread:$0]  %s693_s17, 6144, %s1061_s4, [#allocation4], %s827_s18, %s827_s18, %s828_s19  }
 0x256   :  { %824 = dma.done.wait [#allocation4], 6144  }
 0x257   :  { %825 = vsyncadd [#allocation4], 4294961152 }
 0x258   :  { %702 = vsyncpa [#allocation3], 1 }
 0x259   :  { %703 = vsyncpa [#allocation4], 1 }

</bundles_post_ra>
